<compile_context>
chip_gen: v6e
topology: v6e:2x2x1
jax: 0.10.0
libtpu: 0.0.40
codegen_flags: <defaults>
</compile_context>

<pallas_src>
import jax
import jax.numpy as jnp
from jax.experimental import pallas as pl
from jax.experimental.pallas import tpu as pltpu

IN_DIM = 28 * 28      # 784
HID = 64
OUT_DIM = 10
TILE_B_MAX = 1024     # large batch tile (amortizes ~0.35us/step); ~3.2MB f32 x-block


def _round_up(n, m):
    return ((n + m - 1) // m) * m


def _choose_tiling(batch):
    """Pick (b_pad, tile_b): minimal 16-row padding, >=2 tiles when there is enough
    work (v7x dual-TC sharding), tiles capped at TILE_B_MAX for huge batches."""
    b_pad = _round_up(batch, 16)
    if b_pad < 32:
        return b_pad, b_pad                       # single tiny tile
    n_tiles = max(-(-b_pad // TILE_B_MAX), 2)     # ceil-div, but at least 2 tiles
    tile_b = _round_up(-(-b_pad // n_tiles), 16)
    return tile_b * n_tiles, tile_b


def mlp_kernel(x_ref, w1_ref, b1_ref, w2_ref, b2_ref, w3_ref, b3_ref,
               w4_ref, b4_ref, o_ref):
    bf16 = jnp.bfloat16
    f32 = jnp.float32

    # In-kernel bf16 cast of x (and weights): avoids a separate pad/convert pass in HBM.
    x = x_ref[...].astype(bf16)

    # layer1 + relu   (bf16 MXU, f32 accumulate)
    h = jnp.dot(x, w1_ref[...].astype(bf16), preferred_element_type=f32) + b1_ref[...]
    h = jnp.maximum(h, 0.0).astype(bf16)
    # layer2 + relu
    h = jnp.dot(h, w2_ref[...].astype(bf16), preferred_element_type=f32) + b2_ref[...]
    h = jnp.maximum(h, 0.0).astype(bf16)
    # layer3 + relu
    h = jnp.dot(h, w3_ref[...].astype(bf16), preferred_element_type=f32) + b3_ref[...]
    h = jnp.maximum(h, 0.0).astype(bf16)
    # layer4 at true width 10 (Mosaic lane-pads in VMEM; no -1e30 trick needed)
    logits = jnp.dot(h, w4_ref[...].astype(bf16), preferred_element_type=f32) + b4_ref[...]

    # log_softmax along the 10-wide feature axis, all in f32.
    m = jnp.max(logits, axis=-1, keepdims=True)
    shifted = logits - m
    lse = jnp.log(jnp.sum(jnp.exp(shifted), axis=-1, keepdims=True))
    o_ref[...] = (shifted - lse).astype(o_ref.dtype)


@jax.jit
def net_forward(x, params):
    (w1, b1, w2, b2, w3, b3, w4, b4) = params
    B = x.shape[0]
    b_pad, tile_b = _choose_tiling(B)
    grid = (b_pad // tile_b,)

    # Only row padding (and only when B isn't already a multiple of 16); no lane pad,
    # no dtype-change copy of x.
    xp = x if b_pad == B else jnp.pad(x, ((0, b_pad - B), (0, 0)))

    # Weights / biases are small; constant index_map keeps them VMEM-resident.
    def resident(shape):
        return pl.BlockSpec(shape, lambda i: (0, 0))

    weight_bytes = (IN_DIM * HID + 2 * HID * HID + HID * OUT_DIM
                    + 3 * HID + OUT_DIM) * 4
    cost = pl.CostEstimate(
        flops=2 * b_pad * (IN_DIM * HID + 2 * HID * HID + HID * OUT_DIM),
        transcendentals=b_pad * OUT_DIM,
        bytes_accessed=b_pad * IN_DIM * 4 + weight_bytes + b_pad * OUT_DIM * 4,
    )

    out = pl.pallas_call(
        mlp_kernel,
        out_shape=jax.ShapeDtypeStruct((b_pad, OUT_DIM), jnp.float32),
        grid_spec=pltpu.PrefetchScalarGridSpec(
            num_scalar_prefetch=0,
            grid=grid,
            in_specs=[
                pl.BlockSpec((tile_b, IN_DIM), lambda i: (i, 0)),   # x tile (f32)
                resident((IN_DIM, HID)),  resident((1, HID)),       # layer1
                resident((HID, HID)),     resident((1, HID)),       # layer2
                resident((HID, HID)),     resident((1, HID)),       # layer3
                resident((HID, OUT_DIM)), resident((1, OUT_DIM)),   # layer4
            ],
            out_specs=pl.BlockSpec((tile_b, OUT_DIM), lambda i: (i, 0)),
        ),
        compiler_params=pltpu.CompilerParams(
            dimension_semantics=("parallel",)),
        cost_estimate=cost,
    )(xp, w1, b1, w2, b2, w3, b3, w4, b4)

    return out if b_pad == B else out[:B]


def init_params(key):
    """Deterministic PyTorch-style init: U(-1/sqrt(fan_in), 1/sqrt(fan_in))."""
    dims = [(IN_DIM, HID), (HID, HID), (HID, HID), (HID, OUT_DIM)]
    params = []
    for (fan_in, fan_out) in dims:
        key, kw, kb = jax.random.split(key, 3)
        bound = 1.0 / jnp.sqrt(fan_in)
        w = jax.random.uniform(kw, (fan_in, fan_out), jnp.float32, -bound, bound)
        b = jax.random.uniform(kb, (1, fan_out), jnp.float32, -bound, bound)
        params += [w, b]
    return tuple(params)


def reference_forward_f32(x, params):
    (w1, b1, w2, b2, w3, b3, w4, b4) = params
    h = jax.nn.relu(x @ w1 + b1)
    h = jax.nn.relu(h @ w2 + b2)
    h = jax.nn.relu(h @ w3 + b3)
    logits = h @ w4 + b4
    return jax.nn.log_softmax(logits, axis=1)


def reference_forward_bf16(x, params):
    """Reference mirroring the kernel's bf16-input / f32-accumulate precision."""
    (w1, b1, w2, b2, w3, b3, w4, b4) = params
    bf = jnp.bfloat16
    f32 = jnp.float32
    h = jax.nn.relu(jnp.dot(x.astype(bf), w1.astype(bf), preferred_element_type=f32) + b1)
    h = jax.nn.relu(jnp.dot(h.astype(bf), w2.astype(bf), preferred_element_type=f32) + b2)
    h = jax.nn.relu(jnp.dot(h.astype(bf), w3.astype(bf), preferred_element_type=f32) + b3)
    logits = jnp.dot(h.astype(bf), w4.astype(bf), preferred_element_type=f32) + b4
    return jax.nn.log_softmax(logits, axis=1)


if __name__ == "__main__":
    key = jax.random.PRNGKey(0)
    key, kx = jax.random.split(key)
    batch = 8
    x = jax.random.normal(kx, (batch, IN_DIM), jnp.float32)
    params = init_params(key)

    out = jax.block_until_ready(net_forward(x, params))

    assert out.shape == (batch, OUT_DIM)
    ref_bf16 = reference_forward_bf16(x, params)
    ref_f32 = reference_forward_f32(x, params)
    assert jnp.allclose(out, ref_bf16, atol=1e-3, rtol=1e-3), "mismatch vs bf16 reference"
    assert jnp.allclose(out, ref_f32, atol=1e-1, rtol=1e-1), "mismatch vs f32 reference"
    print("KERNEL_OK")
</pallas_src>

<mosaic_0001>
module attributes {stable_mosaic.version = 11 : i64} {
  func.func @mlp_kernel(%arg0: i32, %arg1: memref<16x784xf32, #tpu.memory_space<vmem>>, %arg2: memref<784x64xf32, #tpu.memory_space<vmem>>, %arg3: memref<1x64xf32, #tpu.memory_space<vmem>>, %arg4: memref<64x64xf32, #tpu.memory_space<vmem>>, %arg5: memref<1x64xf32, #tpu.memory_space<vmem>>, %arg6: memref<64x64xf32, #tpu.memory_space<vmem>>, %arg7: memref<1x64xf32, #tpu.memory_space<vmem>>, %arg8: memref<64x10xf32, #tpu.memory_space<vmem>>, %arg9: memref<1x10xf32, #tpu.memory_space<vmem>>, %arg10: memref<16x10xf32, #tpu.memory_space<vmem>>) attributes {dimension_semantics = [#tpu.dimension_semantics<parallel>], iteration_bounds = array<i64: 1>, scalar_prefetch = 0 : i64, scratch_operands = 0 : i64, tpu.core_type = #tpu.core_type<tc>, window_params = [{transform_indices = @transform_0, window_bounds = array<i64: 16, 784>}, {pipeline_mode = #tpu.pipeline_mode<synchronous>, transform_indices = @transform_1, window_bounds = array<i64: 784, 64>}, {pipeline_mode = #tpu.pipeline_mode<synchronous>, transform_indices = @transform_2, window_bounds = array<i64: 1, 64>}, {pipeline_mode = #tpu.pipeline_mode<synchronous>, transform_indices = @transform_3, window_bounds = array<i64: 64, 64>}, {pipeline_mode = #tpu.pipeline_mode<synchronous>, transform_indices = @transform_4, window_bounds = array<i64: 1, 64>}, {pipeline_mode = #tpu.pipeline_mode<synchronous>, transform_indices = @transform_5, window_bounds = array<i64: 64, 64>}, {pipeline_mode = #tpu.pipeline_mode<synchronous>, transform_indices = @transform_6, window_bounds = array<i64: 1, 64>}, {pipeline_mode = #tpu.pipeline_mode<synchronous>, transform_indices = @transform_7, window_bounds = array<i64: 64, 10>}, {pipeline_mode = #tpu.pipeline_mode<synchronous>, transform_indices = @transform_8, window_bounds = array<i64: 1, 10>}, {transform_indices = @transform_9, window_bounds = array<i64: 16, 10>}]} {
    %c0 = arith.constant 0 : index
    %c0_0 = arith.constant 0 : index
    %0 = vector.load %arg1[%c0, %c0_0] : memref<16x784xf32, #tpu.memory_space<vmem>>, vector<16x784xf32>
    %1 = arith.truncf %0 : vector<16x784xf32> to vector<16x784xbf16>
    %c0_1 = arith.constant 0 : index
    %c0_2 = arith.constant 0 : index
    %2 = vector.load %arg2[%c0_1, %c0_2] : memref<784x64xf32, #tpu.memory_space<vmem>>, vector<784x64xf32>
    %3 = arith.truncf %2 : vector<784x64xf32> to vector<784x64xbf16>
    %cst = arith.constant dense<0.000000e+00> : vector<16x64xf32>
    %4 = tpu.matmul %1, %3, %cst {dimension_numbers = #tpu.dot_dimension_numbers<[1], [0], [0], [1], [0, 0, 1, 1], [], []>} : vector<16x784xbf16>, vector<784x64xbf16>, vector<16x64xf32> -> vector<16x64xf32>
    %c0_3 = arith.constant 0 : index
    %c0_4 = arith.constant 0 : index
    %5 = vector.load %arg3[%c0_3, %c0_4] : memref<1x64xf32, #tpu.memory_space<vmem>>, vector<1x64xf32>
    %6 = vector.broadcast %5 : vector<1x64xf32> to vector<16x64xf32>
    %7 = arith.addf %4, %6 : vector<16x64xf32>
    %cst_5 = arith.constant 0.000000e+00 : f32
    %8 = vector.broadcast %cst_5 : f32 to vector<16x64xf32>
    %9 = arith.maximumf %7, %8 : vector<16x64xf32>
    %10 = arith.truncf %9 : vector<16x64xf32> to vector<16x64xbf16>
    %c0_6 = arith.constant 0 : index
    %c0_7 = arith.constant 0 : index
    %11 = vector.load %arg4[%c0_6, %c0_7] : memref<64x64xf32, #tpu.memory_space<vmem>>, vector<64x64xf32>
    %12 = arith.truncf %11 : vector<64x64xf32> to vector<64x64xbf16>
    %cst_8 = arith.constant dense<0.000000e+00> : vector<16x64xf32>
    %13 = tpu.matmul %10, %12, %cst_8 {dimension_numbers = #tpu.dot_dimension_numbers<[1], [0], [0], [1], [0, 0, 1, 1], [], []>} : vector<16x64xbf16>, vector<64x64xbf16>, vector<16x64xf32> -> vector<16x64xf32>
    %c0_9 = arith.constant 0 : index
    %c0_10 = arith.constant 0 : index
    %14 = vector.load %arg5[%c0_9, %c0_10] : memref<1x64xf32, #tpu.memory_space<vmem>>, vector<1x64xf32>
    %15 = vector.broadcast %14 : vector<1x64xf32> to vector<16x64xf32>
    %16 = arith.addf %13, %15 : vector<16x64xf32>
    %cst_11 = arith.constant 0.000000e+00 : f32
    %17 = vector.broadcast %cst_11 : f32 to vector<16x64xf32>
    %18 = arith.maximumf %16, %17 : vector<16x64xf32>
    %19 = arith.truncf %18 : vector<16x64xf32> to vector<16x64xbf16>
    %c0_12 = arith.constant 0 : index
    %c0_13 = arith.constant 0 : index
    %20 = vector.load %arg6[%c0_12, %c0_13] : memref<64x64xf32, #tpu.memory_space<vmem>>, vector<64x64xf32>
    %21 = arith.truncf %20 : vector<64x64xf32> to vector<64x64xbf16>
    %cst_14 = arith.constant dense<0.000000e+00> : vector<16x64xf32>
    %22 = tpu.matmul %19, %21, %cst_14 {dimension_numbers = #tpu.dot_dimension_numbers<[1], [0], [0], [1], [0, 0, 1, 1], [], []>} : vector<16x64xbf16>, vector<64x64xbf16>, vector<16x64xf32> -> vector<16x64xf32>
    %c0_15 = arith.constant 0 : index
    %c0_16 = arith.constant 0 : index
    %23 = vector.load %arg7[%c0_15, %c0_16] : memref<1x64xf32, #tpu.memory_space<vmem>>, vector<1x64xf32>
    %24 = vector.broadcast %23 : vector<1x64xf32> to vector<16x64xf32>
    %25 = arith.addf %22, %24 : vector<16x64xf32>
    %cst_17 = arith.constant 0.000000e+00 : f32
    %26 = vector.broadcast %cst_17 : f32 to vector<16x64xf32>
    %27 = arith.maximumf %25, %26 : vector<16x64xf32>
    %28 = arith.truncf %27 : vector<16x64xf32> to vector<16x64xbf16>
    %c0_18 = arith.constant 0 : index
    %c0_19 = arith.constant 0 : index
    %29 = vector.load %arg8[%c0_18, %c0_19] : memref<64x10xf32, #tpu.memory_space<vmem>>, vector<64x10xf32>
    %30 = arith.truncf %29 : vector<64x10xf32> to vector<64x10xbf16>
    %cst_20 = arith.constant dense<0.000000e+00> : vector<16x10xf32>
    %31 = tpu.matmul %28, %30, %cst_20 {dimension_numbers = #tpu.dot_dimension_numbers<[1], [0], [0], [1], [0, 0, 1, 1], [], []>} : vector<16x64xbf16>, vector<64x10xbf16>, vector<16x10xf32> -> vector<16x10xf32>
    %c0_21 = arith.constant 0 : index
    %c0_22 = arith.constant 0 : index
    %32 = vector.load %arg9[%c0_21, %c0_22] : memref<1x10xf32, #tpu.memory_space<vmem>>, vector<1x10xf32>
    %33 = vector.broadcast %32 : vector<1x10xf32> to vector<16x10xf32>
    %34 = arith.addf %31, %33 : vector<16x10xf32>
    %cst_23 = arith.constant dense<0xFF800000> : vector<16xf32>
    %35 = vector.multi_reduction <maximumf>, %34, %cst_23 [1] : vector<16x10xf32> to vector<16xf32>
    %36 = vector.shape_cast %35 : vector<16xf32> to vector<16x1xf32>
    %37 = vector.broadcast %36 : vector<16x1xf32> to vector<16x10xf32>
    %38 = arith.subf %34, %37 : vector<16x10xf32>
    %39 = math.exp %38 : vector<16x10xf32>
    %cst_24 = arith.constant dense<0.000000e+00> : vector<16xf32>
    %40 = vector.multi_reduction <add>, %39, %cst_24 [1] : vector<16x10xf32> to vector<16xf32>
    %41 = vector.shape_cast %40 : vector<16xf32> to vector<16x1xf32>
    %42 = math.log %41 : vector<16x1xf32>
    %43 = vector.broadcast %42 : vector<16x1xf32> to vector<16x10xf32>
    %44 = arith.subf %38, %43 : vector<16x10xf32>
    %c0_25 = arith.constant 0 : index
    %c0_26 = arith.constant 0 : index
    %45 = vector.load %arg10[%c0_25, %c0_26] : memref<16x10xf32, #tpu.memory_space<vmem>>, vector<16x10xf32>
    tpu.vector_store %arg10[%c0_25, %c0_26], %44 {strides = array<i32>} : memref<16x10xf32, #tpu.memory_space<vmem>>, vector<16x10xf32>,
    return
  }
  func.func @transform_0(%arg0: i32) -> (i32, i32) {
    %c0_i32 = arith.constant 0 : i32
    %c0_i32_0 = arith.constant 0 : i32
    return %arg0, %c0_i32 : i32, i32
  }
  func.func @transform_1(%arg0: i32) -> (i32, i32) {
    %c0_i32 = arith.constant 0 : i32
    %c0_i32_0 = arith.constant 0 : i32
    %c0_i32_1 = arith.constant 0 : i32
    return %c0_i32, %c0_i32_0 : i32, i32
  }
  func.func @transform_2(%arg0: i32) -> (i32, i32) {
    %c0_i32 = arith.constant 0 : i32
    %c0_i32_0 = arith.constant 0 : i32
    %c0_i32_1 = arith.constant 0 : i32
    return %c0_i32, %c0_i32_0 : i32, i32
  }
  func.func @transform_3(%arg0: i32) -> (i32, i32) {
    %c0_i32 = arith.constant 0 : i32
    %c0_i32_0 = arith.constant 0 : i32
    %c0_i32_1 = arith.constant 0 : i32
    return %c0_i32, %c0_i32_0 : i32, i32
  }
  func.func @transform_4(%arg0: i32) -> (i32, i32) {
    %c0_i32 = arith.constant 0 : i32
    %c0_i32_0 = arith.constant 0 : i32
    %c0_i32_1 = arith.constant 0 : i32
    return %c0_i32, %c0_i32_0 : i32, i32
  }
  func.func @transform_5(%arg0: i32) -> (i32, i32) {
    %c0_i32 = arith.constant 0 : i32
    %c0_i32_0 = arith.constant 0 : i32
    %c0_i32_1 = arith.constant 0 : i32
    return %c0_i32, %c0_i32_0 : i32, i32
  }
  func.func @transform_6(%arg0: i32) -> (i32, i32) {
    %c0_i32 = arith.constant 0 : i32
    %c0_i32_0 = arith.constant 0 : i32
    %c0_i32_1 = arith.constant 0 : i32
    return %c0_i32, %c0_i32_0 : i32, i32
  }
  func.func @transform_7(%arg0: i32) -> (i32, i32) {
    %c0_i32 = arith.constant 0 : i32
    %c0_i32_0 = arith.constant 0 : i32
    %c0_i32_1 = arith.constant 0 : i32
    return %c0_i32, %c0_i32_0 : i32, i32
  }
  func.func @transform_8(%arg0: i32) -> (i32, i32) {
    %c0_i32 = arith.constant 0 : i32
    %c0_i32_0 = arith.constant 0 : i32
    %c0_i32_1 = arith.constant 0 : i32
    return %c0_i32, %c0_i32_0 : i32, i32
  }
  func.func @transform_9(%arg0: i32) -> (i32, i32) {
    %c0_i32 = arith.constant 0 : i32
    %c0_i32_0 = arith.constant 0 : i32
    return %arg0, %c0_i32 : i32, i32
  }
}

</mosaic_0001>

<bundles_post_ra>
// kernel: net_forward.1
= control target key start
LH: loop header
LB: loop body
LE: loop exit
PB: predicated region body
PF: predicated region fallthrough
CT: control target
= control target key end

     0   :  { %vm750_vm0 = vmmov 0   ;;  %vm208_vm1 = vcmask 130048   ;;  %vm398_vm2 = vcmask 523264   ;;  %vm575_vm3 = vcmask 80896   ;;  %s1257_s1 = inlined_call_operand.vmem [shape: f32[784,64], index: 1, kind: input, shape index: {}]   ;;  %s1258_s0 = inlined_call_operand.vmem [shape: f32[16,784], index: 0, kind: input, shape index: {}]   ;;  %s1259_s3 = inlined_call_operand.vmem [shape: f32[64,64], index: 3, kind: input, shape index: {}]   ;;  %s1260_s2 = inlined_call_operand.vmem [shape: f32[1,64], index: 2, kind: input, shape index: {}]   ;;  %s1261_s5 = inlined_call_operand.vmem [shape: f32[64,64], index: 5, kind: input, shape index: {}]   ;;  %s1262_s7 = inlined_call_operand.vmem [shape: f32[64,10], index: 7, kind: input, shape index: {}]   ;;  %s1263_s4 = inlined_call_operand.vmem [shape: f32[1,64], index: 4, kind: input, shape index: {}]   ;;  %s1264_s6 = inlined_call_operand.vmem [shape: f32[1,64], index: 6, kind: input, shape index: {}]   ;;  %s1265_s8 = inlined_call_operand.vmem [shape: f32[1,10], index: 8, kind: input, shape index: {}]   ;;  %s1266_s9 = inlined_call_operand.vmem [shape: f32[16,10], index: 9, kind: output, shape index: {}]  }
   0x1   :  { %v84_v0 = vld [vmem:[%s1257_s1 + $0xf0] sm:$0xff]  ;;  %v85_v1 = vld [vmem:[%s1257_s1 + $0xf8] sm:$0xff]  ;;  %v82_v11 = vld [vmem:[%s1257_s1 + $0xe0] sm:$0xff] }
   0x2   :  { %v68_v2 = vld [vmem:[%s1257_s1 + $0x70] sm:$0xff]  ;;  %v167_v3 = vpack.c.bf16 %v85_v1, %v84_v0  ;;  %v69_v4 = vld [vmem:[%s1257_s1 + $0x78] sm:$0xff]  ;;  %v83_v13 = vld [vmem:[%s1257_s1 + $0xe8] sm:$0xff] }
   0x3   :  { %v116_v5 = vld [vmem:[%s1257_s1 + $0x1f0] sm:$0xff]  ;;  %v117_v6 = vld [vmem:[%s1257_s1 + $0x1f8] sm:$0xff]  ;;  %v159_v7 = vpack.c.bf16 %v69_v4, %v68_v2  ;;  %v66_v14 = vld [vmem:[%s1257_s1 + $0x60] sm:$0xff]  ;;  %v166_v16 = vpack.c.bf16 %v83_v13, %v82_v11 }
   0x4   :  { %v183_v8 = vpack.c.bf16 %v117_v6, %v116_v5  ;;  %v100_v9 = vld [vmem:[%s1257_s1 + $0x170] sm:$0xff]  ;;  %v101_v10 = vld [vmem:[%s1257_s1 + $0x178] sm:$0xff]  ;;  %614 = vmatprep.subr.bf16.mxu0 %v167_v3  ;;  %v67_v15 = vld [vmem:[%s1257_s1 + $0x68] sm:$0xff] }
   0x5   :  { %v175_v12 = vpack.c.bf16 %v101_v10, %v100_v9  ;;  %615 = vmatpush3.bf16.msra.mxu0 %v159_v7  ;;  %v158_v17 = vpack.c.bf16 %v67_v15, %v66_v14  ;;  %v114_v18 = vld [vmem:[%s1257_s1 + $0x1e0] sm:$0xff]  ;;  %v115_v19 = vld [vmem:[%s1257_s1 + $0x1e8] sm:$0xff]  ;;  %v80_v23 = vld [vmem:[%s1257_s1 + $0xd0] sm:$0xff] }
   0x6   :  { %636 = vmatprep.subr.bf16.mxu1 %v183_v8  ;;  %v98_v20 = vld [vmem:[%s1257_s1 + $0x160] sm:$0xff]  ;;  %v182_v21 = vpack.c.bf16 %v115_v19, %v114_v18  ;;  %v99_v22 = vld [vmem:[%s1257_s1 + $0x168] sm:$0xff]  ;;  %v81_v24 = vld [vmem:[%s1257_s1 + $0xd8] sm:$0xff]  ;;  %616 = vmatprep.subr.bf16.mxu0 %v166_v16 }
   0x7   :  { %637 = vmatpush3.bf16.msra.mxu1 %v175_v12  ;;  %v174_v25 = vpack.c.bf16 %v99_v22, %v98_v20  ;;  %v165_v26 = vpack.c.bf16 %v81_v24, %v80_v23  ;;  %v64_v27 = vld [vmem:[%s1257_s1 + $0x50] sm:$0xff]  ;;  %v65_v28 = vld [vmem:[%s1257_s1 + $0x58] sm:$0xff]  ;;  %v78_v35 = vld [vmem:[%s1257_s1 + $0xc0] sm:$0xff] }
   0x8   :  { %v112_v29 = vld [vmem:[%s1257_s1 + $0x1d0] sm:$0xff]  ;;  %638 = vmatprep.subr.bf16.mxu1 %v182_v21  ;;  %v113_v30 = vld [vmem:[%s1257_s1 + $0x1d8] sm:$0xff]  ;;  %v157_v33 = vpack.c.bf16 %v65_v28, %v64_v27  ;;  %v79_v36 = vld [vmem:[%s1257_s1 + $0xc8] sm:$0xff] }
   0x9   :  { %v96_v31 = vld [vmem:[%s1257_s1 + $0x150] sm:$0xff]  ;;  %v97_v32 = vld [vmem:[%s1257_s1 + $0x158] sm:$0xff]  ;;  %617 = vmatpush3.bf16.msra.mxu0 %v158_v17  ;;  %v181_v34 = vpack.c.bf16 %v113_v30, %v112_v29  ;;  %v62_v37 = vld [vmem:[%s1257_s1 + $0x40] sm:$0xff]  ;;  %v164_v39 = vpack.c.bf16 %v79_v36, %v78_v35 }
   0xa   :  { %618 = vmatprep.subr.bf16.mxu0 %v165_v26  ;;  %v173_v38 = vpack.c.bf16 %v97_v32, %v96_v31  ;;  %v63_v40 = vld [vmem:[%s1257_s1 + $0x48] sm:$0xff]  ;;  %v110_v41 = vld [vmem:[%s1257_s1 + $0x1c0] sm:$0xff]  ;;  %v76_v46 = vld [vmem:[%s1257_s1 + $0xb0] sm:$0xff] }
   0xb   :  { %639 = vmatpush3.bf16.msra.mxu1 %v174_v25  ;;  %v111_v42 = vld [vmem:[%s1257_s1 + $0x1c8] sm:$0xff]  ;;  %v94_v44 = vld [vmem:[%s1257_s1 + $0x140] sm:$0xff]  ;;  %v77_v47 = vld [vmem:[%s1257_s1 + $0xb8] sm:$0xff]  ;;  %v156_v48 = vpack.c.bf16 %v63_v40, %v62_v37 }
   0xc   :  { %640 = vmatprep.subr.bf16.mxu1 %v181_v34  ;;  %v180_v43 = vpack.c.bf16 %v111_v42, %v110_v41  ;;  %v95_v45 = vld [vmem:[%s1257_s1 + $0x148] sm:$0xff]  ;;  %v108_v49 = vld [vmem:[%s1257_s1 + $0x1b0] sm:$0xff]  ;;  %v109_v50 = vld [vmem:[%s1257_s1 + $0x1b8] sm:$0xff]  ;;  %v163_v52 = vpack.c.bf16 %v77_v47, %v76_v46 }
   0xd   :  { %619 = vmatpush3.bf16.msra.mxu0 %v157_v33  ;;  %v172_v51 = vpack.c.bf16 %v95_v45, %v94_v44  ;;  %v60_v53 = vld [vmem:[%s1257_s1 + $0x30] sm:$0xff]  ;;  %v61_v54 = vld [vmem:[%s1257_s1 + $0x38] sm:$0xff]  ;;  %v179_v56 = vpack.c.bf16 %v109_v50, %v108_v49  ;;  %v74_v58 = vld [vmem:[%s1257_s1 + $0xa0] sm:$0xff] }
   0xe   :  { %620 = vmatprep.subr.bf16.mxu0 %v164_v39  ;;  %v92_v55 = vld [vmem:[%s1257_s1 + $0x130] sm:$0xff]  ;;  %v93_v57 = vld [vmem:[%s1257_s1 + $0x138] sm:$0xff]  ;;  %v75_v59 = vld [vmem:[%s1257_s1 + $0xa8] sm:$0xff]  ;;  %v155_v62 = vpack.c.bf16 %v61_v54, %v60_v53 }
   0xf   :  { %641 = vmatpush3.bf16.msra.mxu1 %v173_v38  ;;  %v106_v60 = vld [vmem:[%s1257_s1 + $0x1a0] sm:$0xff]  ;;  %v107_v61 = vld [vmem:[%s1257_s1 + $0x1a8] sm:$0xff]  ;;  %v171_v63 = vpack.c.bf16 %v93_v57, %v92_v55  ;;  %v162_v0 = vpack.c.bf16 %v75_v59, %v74_v58  ;;  %v72_v6 = vld [vmem:[%s1257_s1 + $0x90] sm:$0xff]  ;;  %v749_v57 = vmov 0.0  }
  0x10   :  { %642 = vmatprep.subr.bf16.mxu1 %v180_v43  ;;  %v58_v1 = vld [vmem:[%s1257_s1 + $0x20] sm:$0xff]  ;;  %v59_v2 = vld [vmem:[%s1257_s1 + $0x28] sm:$0xff]  ;;  %v178_v4 = vpack.c.bf16 %v107_v61, %v106_v60  ;;  %v73_v7 = vld [vmem:[%s1257_s1 + $0x98] sm:$0xff] }
  0x11   :  { %621 = vmatpush3.bf16.msra.mxu0 %v156_v48  ;;  %v90_v3 = vld [vmem:[%s1257_s1 + $0x120] sm:$0xff]  ;;  %v91_v5 = vld [vmem:[%s1257_s1 + $0x128] sm:$0xff]  ;;  %v104_v8 = vld [vmem:[%s1257_s1 + $0x190] sm:$0xff]  ;;  %v154_v10 = vpack.c.bf16 %v59_v2, %v58_v1  ;;  %v161_v15 = vpack.c.bf16 %v73_v7, %v72_v6 }
  0x12   :  { %622 = vmatprep.subr.bf16.mxu0 %v163_v52  ;;  %v105_v9 = vld [vmem:[%s1257_s1 + $0x198] sm:$0xff]  ;;  %v56_v11 = vld [vmem:[%s1257_s1 + $0x10] sm:$0xff]  ;;  %v34_v13 = vld [vmem:[%s1258_s0 + $0x8] sm:$0xff]  ;;  %v170_v14 = vpack.c.bf16 %v91_v5, %v90_v3 }
  0x13   :  { %643 = vmatpush3.bf16.msra.mxu1 %v172_v51  ;;  %v57_v12 = vld [vmem:[%s1257_s1 + $0x18] sm:$0xff]  ;;  %v88_v16 = vld [vmem:[%s1257_s1 + $0x110] sm:$0xff]  ;;  %v41_v18 = vld [vmem:[%s1258_s0 + $0x40] sm:$0xff]  ;;  %v177_v19 = vpack.c.bf16 %v105_v9, %v104_v8 }
  0x14   :  { %644 = vmatprep.subr.bf16.mxu1 %v179_v56  ;;  %v89_v17 = vld [vmem:[%s1257_s1 + $0x118] sm:$0xff]  ;;  %v70_v20 = vld [vmem:[%s1257_s1 + $0x80] sm:$0xff]  ;;  %v71_v21 = vld [vmem:[%s1257_s1 + $0x88] sm:$0xff]  ;;  %v48_v23 = vpack.c.bf16 %v41_v18, %v34_v13  ;;  %v153_v27 = vpack.c.bf16 %v57_v12, %v56_v11 }
  0x15   :  { %623 = vmatpush3.bf16.msra.mxu0 %v155_v62  ;;  %v102_v22 = vld [vmem:[%s1257_s1 + $0x180] sm:$0xff]  ;;  %v103_v24 = vld [vmem:[%s1257_s1 + $0x188] sm:$0xff]  ;;  %v36_v25 = vld [vmem:[%s1258_s0 + $0x18] sm:$0xff]  ;;  %v169_v29 = vpack.c.bf16 %v89_v17, %v88_v16  ;;  %v160_v30 = vpack.c.bf16 %v71_v21, %v70_v20 }
  0x16   :  { %624 = vmatprep.subr.bf16.mxu0 %v162_v0  ;;  %v43_v26 = vld [vmem:[%s1258_s0 + $0x50] sm:$0xff]  ;;  %244 = vmatprep.mubr.bf16.mxu0 %v48_v23  ;;  %v54_v31 = vld [vmem:[%s1257_s1] sm:$0xff]  ;;  %v55_v32 = vld [vmem:[%s1257_s1 + $0x8] sm:$0xff]  ;;  %v176_v34 = vpack.c.bf16 %v103_v24, %v102_v22 }
  0x17   :  { %645 = vmatpush3.bf16.msra.mxu1 %v171_v63  ;;  %v50_v28 = vpack.c.bf16 %v43_v26, %v36_v25  ;;  %v86_v33 = vld [vmem:[%s1257_s1 + $0x100] sm:$0xff]  ;;  %v87_v35 = vld [vmem:[%s1257_s1 + $0x108] sm:$0xff]  ;;  %v148_v36 = vld [vmem:[%s1257_s1 + $0x2f0] sm:$0xff]  ;;  %v152_v38 = vpack.c.bf16 %v55_v32, %v54_v31 }
  0x18   :  { %646 = vmatprep.subr.bf16.mxu1 %v178_v4  ;;  %v149_v37 = vld [vmem:[%s1257_s1 + $0x2f8] sm:$0xff]  ;;  %v33_v39 = vld [vmem:[%s1258_s0] sm:$0xff]  ;;  %v132_v41 = vld [vmem:[%s1257_s1 + $0x270] sm:$0xff]  ;;  %v168_v42 = vpack.c.bf16 %v87_v35, %v86_v33 }
  0x19   :  { %625 = vmatpush3.bf16.msra.mxu0 %v154_v10  ;;  %285 = vmatprep.mubr.bf16.mxu1 %v50_v28  ;;  %v40_v40 = vld [vmem:[%s1258_s0 + $0x38] sm:$0xff]  ;;  %v199_v43 = vpack.c.bf16 %v149_v37, %v148_v36  ;;  %v35_v45 = vld [vmem:[%s1258_s0 + $0x10] sm:$0xff]  ;;  %v42_v46 = vld [vmem:[%s1258_s0 + $0x48] sm:$0xff] }
  0x1a   :  { %626 = vmatprep.subr.bf16.mxu0 %v161_v15  ;;  %v133_v44 = vld [vmem:[%s1257_s1 + $0x278] sm:$0xff]  ;;  %v146_v47 = vld [vmem:[%s1257_s1 + $0x2e0] sm:$0xff]  ;;  %v147_v48 = vld [vmem:[%s1257_s1 + $0x2e8] sm:$0xff]  ;;  %v47_v49 = vpack.c.bf16 %v40_v40, %v33_v39  ;;  %v49_v51 = vpack.c.bf16 %v42_v46, %v35_v45 }
  0x1b   :  { %647 = vmatpush3.bf16.msra.mxu1 %v170_v14  ;;  %v191_v50 = vpack.c.bf16 %v133_v44, %v132_v41  ;;  %v198_v52 = vpack.c.bf16 %v147_v48, %v146_v47  ;;  %v130_v53 = vld [vmem:[%s1257_s1 + $0x260] sm:$0xff]  ;;  %v131_v54 = vld [vmem:[%s1257_s1 + $0x268] sm:$0xff]  ;;  %v144_v55 = vld [vmem:[%s1257_s1 + $0x2d0] sm:$0xff] }
  0x1c   :  { %648 = vmatprep.subr.bf16.mxu1 %v177_v19  ;;  %v145_v56 = vld [vmem:[%s1257_s1 + $0x2d8] sm:$0xff]  ;;  %v150_v58 = vld [vmem:[%s1257_s1 + $0x300] sm:$0xff]  ;;  %v151_v59 = vld [vmem:[%s1257_s1 + $0x308] sm:$0xff]  ;;  %v190_v62 = vpack.c.bf16 %v131_v54, %v130_v53 }
  0x1d   :  { %627 = vmatpush3.bf16.msra.mxu0 %v153_v27  ;;  %v38_v60 = vld [vmem:[%s1258_s0 + $0x28] sm:$0xff]  ;;  %v45_v61 = vld [vmem:[%s1258_s0 + $0x60] sm:$0xff]  ;;  %v128_v63 = vld [vmem:[%s1257_s1 + $0x250] sm:$0xff]  ;;  %v200_v0 = vpack.c.bf16 %v151_v59, %v150_v58  ;;  %v197_v2 = vpack.c.bf16 %v145_v56, %v144_v55 }
  0x1e   :  { %628 = vmatprep.subr.bf16.mxu0 %v160_v30  ;;  %v52_v1 = vpack.c.bf16 %v45_v61, %v38_v60  ;;  %v129_v3 = vld [vmem:[%s1257_s1 + $0x258] sm:$0xff]  ;;  %v39_v4 = vld [vmem:[%s1258_s0 + $0x30] sm:$0xff]  ;;  %v46_v5 = vld [vmem:[%s1258_s0 + $0x68] sm:$0xff] }
  0x1f   :  { %649 = vmatpush3.bf16.msra.mxu1 %v169_v29  ;;  %v142_v6 = vld [vmem:[%s1257_s1 + $0x2c0] sm:$0xff]  ;;  %v143_v7 = vld [vmem:[%s1257_s1 + $0x2c8] sm:$0xff]  ;;  %v189_v8 = vpack.c.bf16 %v129_v3, %v128_v63  ;;  %v53_v9 = vpack.c.bf16 %v46_v5, %v39_v4  ;;  %v140_v13 = vld [vmem:[%s1257_s1 + $0x2b0] sm:$0xff] }
  0x20   :  { %650 = vmatprep.subr.bf16.mxu1 %v176_v34  ;;  %v196_v10 = vpack.c.bf16 %v143_v7, %v142_v6  ;;  %v126_v11 = vld [vmem:[%s1257_s1 + $0x240] sm:$0xff]  ;;  %v127_v12 = vld [vmem:[%s1257_s1 + $0x248] sm:$0xff]  ;;  %v141_v14 = vld [vmem:[%s1257_s1 + $0x2b8] sm:$0xff] }
  0x21   :  { %629 = vmatpush3.bf16.msra.mxu0 %v152_v38  ;;  %v188_v15 = vpack.c.bf16 %v127_v12, %v126_v11  ;;  %v195_v16 = vpack.c.bf16 %v141_v14, %v140_v13  ;;  %v124_v17 = vld [vmem:[%s1257_s1 + $0x230] sm:$0xff]  ;;  %v125_v18 = vld [vmem:[%s1257_s1 + $0x238] sm:$0xff]  ;;  %v138_v19 = vld [vmem:[%s1257_s1 + $0x2a0] sm:$0xff] }
  0x22   :  { %658 = vmatprep.subr.bf16.mxu0 %v199_v43  ;;  %v139_v20 = vld [vmem:[%s1257_s1 + $0x2a8] sm:$0xff]  ;;  %v187_v21 = vpack.c.bf16 %v125_v18, %v124_v17  ;;  %v122_v23 = vld [vmem:[%s1257_s1 + $0x220] sm:$0xff]  ;;  %v136_v25 = vld [vmem:[%s1257_s1 + $0x290] sm:$0xff] }
  0x23   :  { %651 = vmatpush3.bf16.msra.mxu1 %v168_v42  ;;  %v194_v22 = vpack.c.bf16 %v139_v20, %v138_v19  ;;  %v123_v24 = vld [vmem:[%s1257_s1 + $0x228] sm:$0xff]  ;;  %v137_v26 = vld [vmem:[%s1257_s1 + $0x298] sm:$0xff]  ;;  %v120_v29 = vld [vmem:[%s1257_s1 + $0x210] sm:$0xff] }
  0x24   :  { %697 = vmatprep.subr.bf16.mxu1 %v749_v57  ;;  %245 = vmatmul.mubr.bf16.vlgmr.msra.gmra.mxu0 %v47_v49  ;;  %v186_v27 = vpack.c.bf16 %v123_v24, %v122_v23  ;;  %v193_v28 = vpack.c.bf16 %v137_v26, %v136_v25  ;;  %v121_v30 = vld [vmem:[%s1257_s1 + $0x218] sm:$0xff]  ;;  %v134_v31 = vld [vmem:[%s1257_s1 + $0x280] sm:$0xff]  ;;  %v135_v32 = vld [vmem:[%s1257_s1 + $0x288] sm:$0xff] }
  0x25   :  { %659 = vmatpush3.bf16.msra.mxu0 %v191_v50  ;;  %326 = vmatprep.mubr.bf16.mxu0 %v52_v1  ;;  %v185_v33 = vpack.c.bf16 %v121_v30, %v120_v29  ;;  %v192_v34 = vpack.c.bf16 %v135_v32, %v134_v31  ;;  %v118_v35 = vld [vmem:[%s1257_s1 + $0x200] sm:$0xff]  ;;  %v119_v36 = vld [vmem:[%s1257_s1 + $0x208] sm:$0xff]  ;;  %v44_v39 = vld [vmem:[%s1258_s0 + $0x58] sm:$0xff] }
  0x26   :  { %286 = vmatmul.mubr.bf16.vlgmr.msra.gmra.mxu1 %v49_v51  ;;  %660 = vmatprep.subr.bf16.mxu0 %v198_v52  ;;  %v184_v37 = vpack.c.bf16 %v119_v36, %v118_v35  ;;  %v37_v38 = vld [vmem:[%s1258_s0 + $0x20] sm:$0xff]  ;;  %v385_v41 = vld [vmem:[%s1259_s3 + $0x30] sm:$0xff]  ;;  %v386_v42 = vld [vmem:[%s1259_s3 + $0x38] sm:$0xff] }
  0x27   :  { %699 = vmatprep.mubr.msk.bf16.mxu1 %vm750_vm0, %v749_v57  ;;  %698 = vmatpush3.bf16.msra.mxu1 %v200_v0  ;;  %v51_v40 = vpack.c.bf16 %v44_v39, %v37_v38  ;;  %v390_v43 = vpack.c.bf16 %v386_v42, %v385_v41  ;;  %v383_v44 = vld [vmem:[%s1259_s3 + $0x20] sm:$0xff]  ;;  %v384_v45 = vld [vmem:[%s1259_s3 + $0x28] sm:$0xff]  ;;  %v381_v47 = vld [vmem:[%s1259_s3 + $0x10] sm:$0xff] }
  0x28   :  { %703 = vmatprep.subr.bf16.mxu1 %v749_v57  ;;  %v389_v46 = vpack.c.bf16 %v384_v45, %v383_v44  ;;  %v382_v48 = vld [vmem:[%s1259_s3 + $0x18] sm:$0xff]  ;;  %v379_v50 = vld [vmem:[%s1259_s3] sm:$0xff]  ;;  %v380_v51 = vld [vmem:[%s1259_s3 + $0x8] sm:$0xff] }
  0x29   :  { %661 = vmatpush3.bf16.msra.mxu0 %v190_v62  ;;  %v388_v49 = vpack.c.bf16 %v382_v48, %v381_v47  ;;  %v387_v52 = vpack.c.bf16 %v380_v51, %v379_v50  ;;  %v448_v30 = vld [vmem:[%s1261_s5 + $0x10] sm:$0xff]  ;;  %v449_v31 = vld [vmem:[%s1261_s5 + $0x18] sm:$0xff]  ;;  %v608_v39 = vld [vmem:[%s1263_s4] ss:$0 sm:$0xff] }
  0x2a   :  { %662 = vmatprep.subr.bf16.mxu0 %v197_v2  ;;  %v606_v2 = vld [vmem:[%s1260_s2] ss:$0 sm:$0xff]  ;;  %v455_v32 = vpack.c.bf16 %v449_v31, %v448_v30  ;;  %v518_v36 = vld [vmem:[%s1262_s7 + $0x30] sm:$0xff]  ;;  %v517_v50 = vld [vmem:[%s1262_s7 + $0x28] sm:$0xff] }
  0x2d   :  { %663 = vmatpush3.bf16.msra.mxu0 %v189_v8 }
  0x2e   :  { %700 = vmatmul.mubr.msk.bf16.vlgmr.msra.gmra.mxu1 %vm208_vm1, %v53_v9  ;;  %664 = vmatprep.subr.bf16.mxu0 %v196_v10 }
  0x2f   :  { %711 = vmatprep.mubr.msk.bf16.mxu1 %vm750_vm0, %v749_v57  ;;  %704 = vmatpush3.bf16.msra.mxu1 %v390_v43 }
  0x30   :  { %705 = vmatprep.subr.bf16.mxu1 %v749_v57 }
  0x31   :  { %665 = vmatpush3.bf16.msra.mxu0 %v188_v15 }
  0x32   :  { %666 = vmatprep.subr.bf16.mxu0 %v195_v16 }
  0x33   :  { %706 = vmatpush3.bf16.msra.mxu1 %v389_v46 }
  0x34   :  { %707 = vmatprep.subr.bf16.mxu1 %v749_v57 }
  0x35   :  { %667 = vmatpush3.bf16.msra.mxu0 %v187_v21  ;;  %v452_v21 = vld [vmem:[%s1261_s5 + $0x30] sm:$0xff] }
  0x36   :  { %668 = vmatprep.subr.bf16.mxu0 %v194_v22  ;;  %v453_v22 = vld [vmem:[%s1261_s5 + $0x38] sm:$0xff] }
  0x37   :  { %708 = vmatpush3.bf16.msra.mxu1 %v388_v49  ;;  %v457_v25 = vpack.c.bf16 %v453_v22, %v452_v21  ;;  %v516_v49 = vld [vmem:[%s1262_s7 + $0x20] sm:$0xff] }
  0x38   :  { %709 = vmatprep.subr.bf16.mxu1 %v749_v57  ;;  %v522_v51 = vpack.c.bf16 %v517_v50, %v516_v49 }
  0x39   :  { %669 = vmatpush3.bf16.msra.mxu0 %v186_v27  ;;  %v450_v27 = vld [vmem:[%s1261_s5 + $0x20] sm:$0xff] }
  0x3a   :  { %670 = vmatprep.subr.bf16.mxu0 %v193_v28  ;;  %v451_v28 = vld [vmem:[%s1261_s5 + $0x28] sm:$0xff] }
  0x3b   :  { %710 = vmatpush3.bf16.msra.mxu1 %v387_v52  ;;  %v456_v29 = vpack.c.bf16 %v451_v28, %v450_v27  ;;  %v514_v52 = vld [vmem:[%s1262_s7 + $0x10] sm:$0xff] }
  0x3c   :  { %715 = vmatprep.subr.bf16.mxu1 %v749_v57 }
  0x3d   :  { %671 = vmatpush3.bf16.msra.mxu0 %v185_v33  ;;  %v446_v33 = vld [vmem:[%s1261_s5] sm:$0xff] }
  0x3e   :  { %672 = vmatprep.subr.bf16.mxu0 %v192_v34  ;;  %v447_v34 = vld [vmem:[%s1261_s5 + $0x8] sm:$0xff] }
  0x3f   :  { %v454_v35 = vpack.c.bf16 %v447_v34, %v446_v33 }
  0x41   :  { %673 = vmatpush3.bf16.msra.mxu0 %v184_v37  ;;  %v519_v37 = vld [vmem:[%s1262_s7 + $0x38] sm:$0xff] }
  0x42   :  { %727 = vmatprep.subr.bf16.mxu0 %v749_v57  ;;  %v523_v38 = vpack.c.bf16 %v519_v37, %v518_v36 }
  0x44   :  { %327 = vmatmul.mubr.bf16.vlgmr.msra.gmra.mxu0 %v51_v40 }
  0x45   :  { %735 = vmatprep.mubr.msk.bf16.mxu0 %vm750_vm0, %v749_v57  ;;  %728 = vmatpush3.bf16.msra.mxu0 %v523_v38 }
  0x46   :  { %729 = vmatprep.subr.bf16.mxu0 %v749_v57 }
  0x49   :  { %730 = vmatpush3.bf16.msra.mxu0 %v522_v51 }
  0x4a   :  { %731 = vmatprep.subr.bf16.mxu0 %v749_v57 }
  0xe4   :  { %v630_v62 = vpop.f32.mrf.mxu0 }
  0xe6   :  { %v652_v53 = vpop.f32.mrf.mxu1  ;;  %v631_v63 = vpop.f32.mrf.mxu0 }
  0xe7   :  { %v632_v1 = vadd.f32 %v631_v63, %v630_v62 }
  0xe8   :  { %v653_v54 = vpop.f32.mrf.mxu1  ;;  %v633_v0 = vpop.f32.mrf.mxu0 }
  0xe9   :  { %v247_v4 = vadd.f32 %v632_v1, %v606_v2  ;;  %v654_v5 = vadd.f32 %v653_v54, %v652_v53  ;;  %v515_v53 = vld [vmem:[%s1262_s7 + $0x18] sm:$0xff] }
  0xea   :  { %v655_v55 = vpop.f32.mrf.mxu1  ;;  %v634_v3 = vpop.f32.mrf.mxu0  ;;  %v521_v54 = vpack.c.bf16 %v515_v53, %v514_v52 }
  0xeb   :  { %v635_v6 = vadd.f32 %v634_v3, %v633_v0  ;;  %v288_v9 = vadd.f32 %v654_v5, %v247_v4  ;;  %v612_v4 = vld [vmem:[%s1265_s8] ss:$0 sm:$0xff] }
  0xec   :  { %v656_v56 = vpop.f32.mrf.mxu1  ;;  %732 = vmatpush3.bf16.msra.mxu0 %v521_v54 }
  0xed   :  { %v250_v10 = vadd.f32 %v635_v6, %v606_v2  ;;  %v657_v11 = vadd.f32 %v656_v56, %v655_v55  ;;  %733 = vmatprep.subr.bf16.mxu0 %v749_v57  ;;  %v512_v55 = vld [vmem:[%s1262_s7] sm:$0xff]  ;;  %v513_v56 = vld [vmem:[%s1262_s7 + $0x8] sm:$0xff] }
  0xee   :  { %v369_v58 = vpop.f32.mrf.mxu1 }
  0xef   :  { %v291_v16 = vadd.f32 %v657_v11, %v250_v10 }
  0xf0   :  { %v701_v59 = vpop.f32.mrf.mxu1 }
  0xf1   :  { %v610_v59 = vld [vmem:[%s1264_s6] ss:$0 sm:$0xff] }
  0xf2   :  { %v372_v60 = vpop.f32.mrf.mxu1 }
  0xf4   :  { %v702_v61 = vpop.f32.mrf.mxu1 }
 0x104   :  { %v674_v7 = vpop.f32.mrf.mxu0 }
 0x106   :  { %v675_v8 = vpop.f32.mrf.mxu0 }
 0x107   :  { %v676_v12 = vadd.f32 %v675_v8, %v674_v7 }
 0x108   :  { %v677_v13 = vpop.f32.mrf.mxu0 }
 0x109   :  { %v329_v14 = vadd.f32 %v676_v12, %v288_v9 }
 0x10a   :  { %v678_v15 = vpop.f32.mrf.mxu0 }
 0x10b   :  { %v679_v17 = vadd.f32 %v678_v15, %v677_v13  ;;  %v370_v18 = vadd.f32 %v369_v58, %v329_v14  ;;  %v520_v58 = vpack.c.bf16 %v513_v56, %v512_v55 }
 0x10d   :  { %v332_v19 = vadd.f32 %v679_v17, %v291_v16  ;;  %v376_v23 = vmax.f32 %v370_v18, 0.0  ;;  %734 = vmatpush3.bf16.msra.mxu0 %v520_v58 }
 0x10f   :  { %v373_v20 = vadd.f32 %v372_v60, %v332_v19 }
 0x111   :  { %v377_v24 = vmax.f32 %v373_v20, 0.0 }
 0x113   :  { %v378_v26 = vpack.c.bf16 %v377_v24, %v376_v23 }
 0x115   :  { %712 = vmatmul.mubr.msk.bf16.vlgmr.msra.gmra.mxu1 %vm398_vm2, %v378_v26 }
 0x116   :  { %716 = vmatpush3.bf16.msra.mxu1 %v457_v25  ;;  %723 = vmatprep.mubr.msk.bf16.mxu1 %vm750_vm0, %v749_v57 }
 0x117   :  { %717 = vmatprep.subr.bf16.mxu1 %v749_v57 }
 0x11a   :  { %718 = vmatpush3.bf16.msra.mxu1 %v456_v29 }
 0x11b   :  { %719 = vmatprep.subr.bf16.mxu1 %v749_v57 }
 0x11e   :  { %720 = vmatpush3.bf16.msra.mxu1 %v455_v32 }
 0x11f   :  { %721 = vmatprep.subr.bf16.mxu1 %v749_v57 }
 0x122   :  { %722 = vmatpush3.bf16.msra.mxu1 %v454_v35 }
 0x1d5   :  { %v436_v40 = vpop.f32.mrf.mxu1 }
 0x1d6   :  { %v437_v42 = vadd.f32 %v608_v39, %v436_v40 }
 0x1d7   :  { %v713_v41 = vpop.f32.mrf.mxu1 }
 0x1d8   :  { %v443_v46 = vmax.f32 %v437_v42, 0.0 }
 0x1d9   :  { %v439_v43 = vpop.f32.mrf.mxu1 }
 0x1da   :  { %v440_v44 = vadd.f32 %v608_v39, %v439_v43 }
 0x1db   :  { %v714_v45 = vpop.f32.mrf.mxu1 }
 0x1dc   :  { %v444_v47 = vmax.f32 %v440_v44, 0.0 }
 0x1de   :  { %v445_v48 = vpack.c.bf16 %v444_v47, %v443_v46 }
 0x1e0   :  { %724 = vmatmul.mubr.msk.bf16.vlgmr.msra.gmra.mxu1 %vm398_vm2, %v445_v48 }
 0x2a0   :  { %v502_v60 = vpop.f32.mrf.mxu1 }
 0x2a1   :  { %v503_v62 = vadd.f32 %v610_v59, %v502_v60 }
 0x2a2   :  { %v725_v61 = vpop.f32.mrf.mxu1 }
 0x2a3   :  { %v509_v1 = vmax.f32 %v503_v62, 0.0 }
 0x2a4   :  { %v505_v63 = vpop.f32.mrf.mxu1 }
 0x2a5   :  { %v506_v0 = vadd.f32 %v610_v59, %v505_v63 }
 0x2a6   :  { %v726_v57 = vpop.f32.mrf.mxu1 }
 0x2a7   :  { %v510_v2 = vmax.f32 %v506_v0, 0.0 }
 0x2a9   :  { %v511_v3 = vpack.c.bf16 %v510_v2, %v509_v1 }
 0x2ab   :  { %736 = vmatmul.mubr.msk.bf16.vlgmr.msra.gmra.mxu0 %vm398_vm2, %v511_v3 }
 0x36b   :  { %v568_v5 = vpop.f32.mrf.mxu0 }
 0x36c   :  { %v569_v6 = vadd.f32 %v612_v4, %v568_v5 }
 0x36d   :  { %v737_v7 = vpop.f32.mrf.mxu0 }
 0x36e   :  { %v576_v8 = vsel %vm575_vm3, %v569_v6, -inf }
 0x36f   :  { %577 = vmax.xlane.f32.xlu0 %v576_v8  ;;  %v571_v9 = vpop.f32.mrf.mxu0 }
 0x370   :  { %v572_v10 = vadd.f32 %v612_v4, %v571_v9 }
 0x371   :  { %v738_v11 = vpop.f32.mrf.mxu0 }
 0x372   :  { %v579_v12 = vsel %vm575_vm3, %v572_v10, -inf }
 0x373   :  { %580 = vmax.xlane.f32.xlu0 %v579_v12 }
 0x3f8   :  { %v578_v13 = vpop.xlane.xlu0 %577 }
 0x3f9   :  { %v582_v14 = vsub.f32 %v569_v6, %v578_v13 }
 0x3fb   :  { %v584_v15 = vmul.f32 1.442695, %v582_v14 }
 0x3fc   :  { %v581_v16 = vpop.xlane.xlu0 %580 }
 0x3fd   :  { %741 = vpow2.f32 %v584_v15  ;;  %v583_v17 = vsub.f32 %v572_v10, %v581_v16 }
 0x3ff   :  { %v586_v18 = vmul.f32 1.442695, %v583_v17 }
 0x401   :  { %743 = vpow2.f32 %v586_v18 }
 0x40a   :  { %v742_v19 = vpop.eup %741 }
 0x40b   :  { %v588_v20 = vsel %vm575_vm3, %v742_v19, 0.0 }
 0x40c   :  { %589 = vadd.xlane.f32.xlu1 %v588_v20 }
 0x40e   :  { %v744_v21 = vpop.eup %743 }
 0x40f   :  { %v591_v22 = vsel %vm575_vm3, %v744_v21, 0.0 }
 0x410   :  { %592 = vadd.xlane.f32.xlu1 %v591_v22 }
 0x495   :  { %v590_v23 = vpop.xlane.xlu1 %589 }
 0x496   :  { %745 = vlog2.f32 %v590_v23 }
 0x499   :  { %v593_v24 = vpop.xlane.xlu1 %592 }
 0x49a   :  { %747 = vlog2.f32 %v593_v24 }
 0x4a3   :  { %v746_v25 = vpop.eup %745 }
 0x4a4   :  { %v595_v26 = vmul.f32 0.6931472, %v746_v25 }
 0x4a6   :  { %v598_v27 = vsub.f32 %v582_v14, %v595_v26 }
 0x4a7   :  { %v748_v28 = vpop.eup %747 }
 0x4a8   :  { %600 = vst.msk [vmem:[%s1266_s9] sm:$0xff] %vm575_vm3, %v598_v27  ;;  %v597_v29 = vmul.f32 0.6931472, %v748_v28 }
 0x4aa   :  { %v599_v30 = vsub.f32 %v583_v17, %v597_v29 }
 0x4ac   :  { %601 = vst.msk [vmem:[%s1266_s9 + $0x8] sm:$0xff] %vm575_vm3, %v599_v30 }

</bundles_post_ra>
